<compile_context>
chip_gen: v7x
topology: tpu7x:2x2x1
jax: 0.10.0
libtpu: 0.0.40
codegen_flags: <defaults>
</compile_context>

<pallas_src>
import functools

import jax
import jax.numpy as jnp
from jax import lax
from jax.experimental import pallas as pl
from jax.experimental.pallas import tpu as pltpu


def _round_up(x, m):
    return ((x + m - 1) // m) * m


def conv_block_kernel(x_ref, xh_ref, w_ref, b_ref, o_ref, *, offsets, tm):
    """One (batch, flat-tile) step of the implicit-GEMM conv.

    x_ref  : (1, Cin, tm)          activation tile over the flat padded volume
    xh_ref : (1, Cin, halo_block)  halo that immediately follows the tile
    w_ref  : (Coutp, K*Cin)        folded weights, resident in VMEM
    b_ref  : (Coutp, 1)            bias (f32), resident in VMEM
    o_ref  : (1, Coutp, tm)        output tile (input dtype), lane-dense in tm
    """
    # (Cin, tm + halo_block): tile + halo, so every tap window is available.
    x_cat = jnp.concatenate([x_ref[0], xh_ref[0]], axis=1)
    # On-chip im2col: row block k holds tap (kd, kh, kw) with flat offset
    # offsets[k] = kd*Hp*Wp + kh*Wp + kw.  All offsets are static Python ints.
    xcol = jnp.concatenate([x_cat[:, o:o + tm] for o in offsets], axis=0)  # (K*Cin, tm)
    # Canonical MXU form: LHS minor dim x RHS major dim, f32 accumulation.
    acc = lax.dot_general(
        w_ref[...], xcol,
        dimension_numbers=(((1,), (0,)), ((), ())),
        preferred_element_type=jnp.float32)                      # (Coutp, tm)
    a = acc + b_ref[...]
    # LeakyReLU(0.2) in f32; cast to the final dtype fused into the store.
    o_ref[0, :, :] = jnp.where(a >= 0, a, 0.2 * a).astype(o_ref.dtype)


@functools.partial(jax.jit, static_argnames=("stride", "tm", "matmul_dtype"))
def conv_block_forward(x_ncdhw, weight, bias, stride=1, tm=512,
                       matmul_dtype=jnp.float32):
    """Forward of conv_block (dim=3, stride=1 / ksize=3 / pad=1).

    x_ncdhw: (N, Cin, D, H, W)  (PyTorch layout)
    weight : (Cout, Cin, 3, 3, 3) (PyTorch Conv3d layout),  bias: (Cout,)
    """
    if stride != 1:
        # TODO(synk): stride=2 (ksize=4) branch of conv_block needs a strided
        # flat-offset output extraction; only the stride=1 path is implemented.
        raise NotImplementedError("only the stride=1 / ksize=3 path is implemented")

    Cout, Cin_w, ksize, _, _ = weight.shape
    N, Cin, D, H, W = x_ncdhw.shape
    assert Cin_w == Cin and ksize == 3
    pad = 1

    Dp, Hp, Wp = D + 2 * pad, H + 2 * pad, W + 2 * pad
    F = Dp * Hp * Wp                       # flat padded volume per batch
    K = ksize ** 3
    Kc = K * Cin

    # Tap offsets in the flat padded index: o = kd*Hp*Wp + kh*Wp + kw.
    offsets = tuple(kd * Hp * Wp + kh * Wp + kw
                    for kd in range(ksize) for kh in range(ksize) for kw in range(ksize))
    halo = offsets[-1]                     # = 2*Hp*Wp + 2*Wp + 2
    halo_block = _round_up(halo, 128)

    # Flat tile size: multiple of halo_block so the halo spec's element offset
    # (i+1)*tm is a whole number of halo-sized blocks (halo_block | tm).
    tm_eff = max(halo_block, (tm // halo_block) * halo_block)
    nt = -(-F // tm_eff)
    Mp = nt * tm_eff

    # NCDHW is already channel-major: pad spatial, flatten, pad flat axis so the
    # last tile's halo read stays in-bounds.  No transpose, no im2col.
    xp = jnp.pad(x_ncdhw, ((0, 0), (0, 0), (pad, pad), (pad, pad), (pad, pad)))
    x_flat = xp.reshape(N, Cin, F)
    x_flat = jnp.pad(x_flat, ((0, 0), (0, 0), (0, Mp + halo_block - F)))
    x_flat = x_flat.astype(matmul_dtype)

    # Weights: (Cout, Cin, kd, kh, kw) -> (Cout, kd, kh, kw, c) -> (Cout, K*Cin);
    # the (kd, kh, kw, c) column order matches the `offsets` x channel concat.
    w_fold = jnp.transpose(weight, (0, 2, 3, 4, 1)).reshape(Cout, Kc)
    Coutp = _round_up(Cout, 8)             # sublane alignment of the output tile
    if Coutp != Cout:
        w_fold = jnp.pad(w_fold, ((0, Coutp - Cout), (0, 0)))
        bias_p = jnp.pad(bias, (0, Coutp - Cout))
    else:
        bias_p = bias
    w_fold = w_fold.astype(matmul_dtype)
    bias2d = bias_p.reshape(Coutp, 1).astype(jnp.float32)

    # Explicit VMEM budget (v7x scoped default is 32 MiB of a 64 MiB core).
    in_b = jnp.dtype(matmul_dtype).itemsize
    out_b = jnp.dtype(x_ncdhw.dtype).itemsize
    vmem_est = (
        2 * Cin * (tm_eff + halo_block) * in_b          # double-buffered act + halo
        + 2 * Coutp * Kc * in_b + 2 * Coutp * 4         # resident weights + bias
        + 2 * Coutp * tm_eff * out_b                    # double-buffered output
        + (Kc + Cin + Coutp) * (tm_eff + halo_block) * 4  # in-kernel im2col/epilogue temps
    )
    vmem_limit = int(min(64 * 1024 * 1024, max(32 * 1024 * 1024, 4 * vmem_est)))
    # For very large Cin / spatial sizes: drop tm, use matmul_dtype=bf16, or add a
    # Cout grid axis; resident weight spec could also use pipeline_mode=pl.Buffered(1).

    kernel = functools.partial(conv_block_kernel, offsets=offsets, tm=tm_eff)

    out_flat = pl.pallas_call(
        kernel,
        out_shape=jax.ShapeDtypeStruct((N, Coutp, Mp), x_ncdhw.dtype),
        grid=(N, nt),
        in_specs=[
            # Main activation tile (lane-dense along the flat index).
            pl.BlockSpec((1, Cin, tm_eff), lambda n, i: (n, 0, i)),
            # Halo tail starting at element offset (i+1)*tm (halo_block | tm).
            pl.BlockSpec((1, Cin, halo_block),
                         lambda n, i: (n, 0, (i + 1) * (tm_eff // halo_block))),
            pl.BlockSpec((Coutp, Kc), lambda n, i: (0, 0)),   # resident weights
            pl.BlockSpec((Coutp, 1), lambda n, i: (0, 0)),    # resident bias
        ],
        out_specs=pl.BlockSpec((1, Coutp, tm_eff), lambda n, i: (n, 0, i)),
        compiler_params=pltpu.CompilerParams(
            dimension_semantics=("parallel", "parallel"),
            vmem_limit_bytes=vmem_limit),
    )(x_flat, x_flat, w_fold, bias2d)

    # Valid outputs sit at flat index d*Hp*Wp + h*Wp + w -> pure slice + reshape
    # (no transpose): (N, Coutp, Mp) -> (N, Cout, D, H, W).
    out = out_flat[:, :Cout, :F].reshape(N, Cout, Dp, Hp, Wp)[:, :, :D, :H, :W]
    return out


def _reference(x_ncdhw, weight, bias, stride=1):
    """Pure-JAX reference (matches PyTorch Conv3d + LeakyReLU(0.2))."""
    out = lax.conv_general_dilated(
        x_ncdhw, weight,
        window_strides=(stride, stride, stride),
        padding=((1, 1), (1, 1), (1, 1)),
        dimension_numbers=("NCDHW", "OIDHW", "NCDHW"))
    out = out + bias.reshape(1, -1, 1, 1, 1)
    return jnp.where(out >= 0, out, 0.2 * out)


if __name__ == "__main__":
    key = jax.random.PRNGKey(0)
    kx, kw, kb = jax.random.split(key, 3)

    # Small shapes consistent with the module: dim=3, in_channels=4, out_channels=8.
    N, Cin, Cout = 2, 4, 8
    D = H = W = 8
    ksize = 3  # stride = 1

    x = jax.random.normal(kx, (N, Cin, D, H, W), dtype=jnp.float32)

    # Deterministic Conv3d-style init (uniform in [-1/sqrt(fan_in), 1/sqrt(fan_in)]).
    fan_in = Cin * ksize ** 3
    bound = 1.0 / (fan_in ** 0.5)
    weight = jax.random.uniform(kw, (Cout, Cin, ksize, ksize, ksize),
                                minval=-bound, maxval=bound, dtype=jnp.float32)
    bias = jax.random.uniform(kb, (Cout,), minval=-bound, maxval=bound,
                              dtype=jnp.float32)

    out = conv_block_forward(x, weight, bias, stride=1)
    out = jax.block_until_ready(out)

    ref = _reference(x, weight, bias, stride=1)
    assert out.shape == ref.shape == (N, Cout, D, H, W)
    err = float(jnp.max(jnp.abs(out - ref)))
    assert err < 5e-4, err

    print("KERNEL_OK")
</pallas_src>

<mosaic_0001>
module attributes {stable_mosaic.version = 11 : i64} {
  func.func @conv_block_kernel(%arg0: i32, %arg1: i32, %arg2: memref<1x4x512xf32, #tpu.memory_space<vmem>>, %arg3: memref<1x4x256xf32, #tpu.memory_space<vmem>>, %arg4: memref<8x108xf32, #tpu.memory_space<vmem>>, %arg5: memref<8x1xf32, #tpu.memory_space<vmem>>, %arg6: memref<1x8x512xf32, #tpu.memory_space<vmem>>) attributes {dimension_semantics = [#tpu.dimension_semantics<parallel>, #tpu.dimension_semantics<parallel>], iteration_bounds = array<i64: 2, 2>, scalar_prefetch = 0 : i64, scratch_operands = 0 : i64, tpu.core_type = #tpu.core_type<tc>, window_params = [{transform_indices = @transform_0, window_bounds = array<i64: 1, 4, 512>}, {transform_indices = @transform_1, window_bounds = array<i64: 1, 4, 256>}, {pipeline_mode = #tpu.pipeline_mode<synchronous>, transform_indices = @transform_2, window_bounds = array<i64: 8, 108>}, {pipeline_mode = #tpu.pipeline_mode<synchronous>, transform_indices = @transform_3, window_bounds = array<i64: 8, 1>}, {transform_indices = @transform_4, window_bounds = array<i64: 1, 8, 512>}]} {
    %c0 = arith.constant 0 : index
    %c0_0 = arith.constant 0 : index
    %c0_1 = arith.constant 0 : index
    %0 = vector.load %arg2[%c0, %c0_0, %c0_1] : memref<1x4x512xf32, #tpu.memory_space<vmem>>, vector<1x4x512xf32>
    %1 = vector.shape_cast %0 : vector<1x4x512xf32> to vector<4x512xf32>
    %c0_2 = arith.constant 0 : index
    %c0_3 = arith.constant 0 : index
    %c0_4 = arith.constant 0 : index
    %2 = vector.load %arg3[%c0_2, %c0_3, %c0_4] : memref<1x4x256xf32, #tpu.memory_space<vmem>>, vector<1x4x256xf32>
    %3 = vector.shape_cast %2 : vector<1x4x256xf32> to vector<4x256xf32>
    %4 = tpu.concatenate %1, %3 in 1 : vector<4x512xf32>, vector<4x256xf32> -> vector<4x768xf32>
    %5 = vector.extract_strided_slice %4 {offsets = [0, 0], sizes = [4, 512], strides = [1, 1]} : vector<4x768xf32> to vector<4x512xf32>
    %6 = vector.extract_strided_slice %4 {offsets = [0, 1], sizes = [4, 512], strides = [1, 1]} : vector<4x768xf32> to vector<4x512xf32>
    %7 = vector.extract_strided_slice %4 {offsets = [0, 2], sizes = [4, 512], strides = [1, 1]} : vector<4x768xf32> to vector<4x512xf32>
    %8 = vector.extract_strided_slice %4 {offsets = [0, 10], sizes = [4, 512], strides = [1, 1]} : vector<4x768xf32> to vector<4x512xf32>
    %9 = vector.extract_strided_slice %4 {offsets = [0, 11], sizes = [4, 512], strides = [1, 1]} : vector<4x768xf32> to vector<4x512xf32>
    %10 = vector.extract_strided_slice %4 {offsets = [0, 12], sizes = [4, 512], strides = [1, 1]} : vector<4x768xf32> to vector<4x512xf32>
    %11 = vector.extract_strided_slice %4 {offsets = [0, 20], sizes = [4, 512], strides = [1, 1]} : vector<4x768xf32> to vector<4x512xf32>
    %12 = vector.extract_strided_slice %4 {offsets = [0, 21], sizes = [4, 512], strides = [1, 1]} : vector<4x768xf32> to vector<4x512xf32>
    %13 = vector.extract_strided_slice %4 {offsets = [0, 22], sizes = [4, 512], strides = [1, 1]} : vector<4x768xf32> to vector<4x512xf32>
    %14 = vector.extract_strided_slice %4 {offsets = [0, 100], sizes = [4, 512], strides = [1, 1]} : vector<4x768xf32> to vector<4x512xf32>
    %15 = vector.extract_strided_slice %4 {offsets = [0, 101], sizes = [4, 512], strides = [1, 1]} : vector<4x768xf32> to vector<4x512xf32>
    %16 = vector.extract_strided_slice %4 {offsets = [0, 102], sizes = [4, 512], strides = [1, 1]} : vector<4x768xf32> to vector<4x512xf32>
    %17 = vector.extract_strided_slice %4 {offsets = [0, 110], sizes = [4, 512], strides = [1, 1]} : vector<4x768xf32> to vector<4x512xf32>
    %18 = vector.extract_strided_slice %4 {offsets = [0, 111], sizes = [4, 512], strides = [1, 1]} : vector<4x768xf32> to vector<4x512xf32>
    %19 = vector.extract_strided_slice %4 {offsets = [0, 112], sizes = [4, 512], strides = [1, 1]} : vector<4x768xf32> to vector<4x512xf32>
    %20 = vector.extract_strided_slice %4 {offsets = [0, 120], sizes = [4, 512], strides = [1, 1]} : vector<4x768xf32> to vector<4x512xf32>
    %21 = vector.extract_strided_slice %4 {offsets = [0, 121], sizes = [4, 512], strides = [1, 1]} : vector<4x768xf32> to vector<4x512xf32>
    %22 = vector.extract_strided_slice %4 {offsets = [0, 122], sizes = [4, 512], strides = [1, 1]} : vector<4x768xf32> to vector<4x512xf32>
    %23 = vector.extract_strided_slice %4 {offsets = [0, 200], sizes = [4, 512], strides = [1, 1]} : vector<4x768xf32> to vector<4x512xf32>
    %24 = vector.extract_strided_slice %4 {offsets = [0, 201], sizes = [4, 512], strides = [1, 1]} : vector<4x768xf32> to vector<4x512xf32>
    %25 = vector.extract_strided_slice %4 {offsets = [0, 202], sizes = [4, 512], strides = [1, 1]} : vector<4x768xf32> to vector<4x512xf32>
    %26 = vector.extract_strided_slice %4 {offsets = [0, 210], sizes = [4, 512], strides = [1, 1]} : vector<4x768xf32> to vector<4x512xf32>
    %27 = vector.extract_strided_slice %4 {offsets = [0, 211], sizes = [4, 512], strides = [1, 1]} : vector<4x768xf32> to vector<4x512xf32>
    %28 = vector.extract_strided_slice %4 {offsets = [0, 212], sizes = [4, 512], strides = [1, 1]} : vector<4x768xf32> to vector<4x512xf32>
    %29 = vector.extract_strided_slice %4 {offsets = [0, 220], sizes = [4, 512], strides = [1, 1]} : vector<4x768xf32> to vector<4x512xf32>
    %30 = vector.extract_strided_slice %4 {offsets = [0, 221], sizes = [4, 512], strides = [1, 1]} : vector<4x768xf32> to vector<4x512xf32>
    %31 = vector.extract_strided_slice %4 {offsets = [0, 222], sizes = [4, 512], strides = [1, 1]} : vector<4x768xf32> to vector<4x512xf32>
    %32 = tpu.concatenate %5, %6, %7, %8, %9, %10, %11, %12, %13, %14, %15, %16, %17, %18, %19, %20 in 0 : vector<4x512xf32>, vector<4x512xf32>, vector<4x512xf32>, vector<4x512xf32>, vector<4x512xf32>, vector<4x512xf32>, vector<4x512xf32>, vector<4x512xf32>, vector<4x512xf32>, vector<4x512xf32>, vector<4x512xf32>, vector<4x512xf32>, vector<4x512xf32>, vector<4x512xf32>, vector<4x512xf32>, vector<4x512xf32> -> vector<64x512xf32>
    %33 = tpu.concatenate %21, %22, %23, %24, %25, %26, %27, %28, %29, %30, %31 in 0 : vector<4x512xf32>, vector<4x512xf32>, vector<4x512xf32>, vector<4x512xf32>, vector<4x512xf32>, vector<4x512xf32>, vector<4x512xf32>, vector<4x512xf32>, vector<4x512xf32>, vector<4x512xf32>, vector<4x512xf32> -> vector<44x512xf32>
    %34 = tpu.concatenate %32, %33 in 0 : vector<64x512xf32>, vector<44x512xf32> -> vector<108x512xf32>
    %c0_5 = arith.constant 0 : index
    %c0_6 = arith.constant 0 : index
    %35 = vector.load %arg4[%c0_5, %c0_6] : memref<8x108xf32, #tpu.memory_space<vmem>>, vector<8x108xf32>
    %cst = arith.constant dense<0.000000e+00> : vector<8x512xf32>
    %36 = tpu.matmul %35, %34, %cst {dimension_numbers = #tpu.dot_dimension_numbers<[1], [0], [0], [1], [0, 0, 1, 1], [], []>} : vector<8x108xf32>, vector<108x512xf32>, vector<8x512xf32> -> vector<8x512xf32>
    %c0_7 = arith.constant 0 : index
    %c0_8 = arith.constant 0 : index
    %37 = vector.load %arg5[%c0_7, %c0_8] : memref<8x1xf32, #tpu.memory_space<vmem>>, vector<8x1xf32>
    %38 = vector.broadcast %37 : vector<8x1xf32> to vector<8x512xf32>
    %39 = arith.addf %36, %38 : vector<8x512xf32>
    %cst_9 = arith.constant 0.000000e+00 : f32
    %40 = vector.broadcast %cst_9 : f32 to vector<8x512xf32>
    %41 = arith.cmpf oge, %39, %40 : vector<8x512xf32>
    %cst_10 = arith.constant 2.000000e-01 : f32
    %42 = vector.broadcast %cst_10 : f32 to vector<8x512xf32>
    %43 = arith.mulf %42, %39 : vector<8x512xf32>
    %44 = arith.select %41, %39, %43 : vector<8x512xi1>, vector<8x512xf32>
    %c0_11 = arith.constant 0 : index
    %c0_12 = arith.constant 0 : index
    %c0_13 = arith.constant 0 : index
    %45 = vector.load %arg6[%c0_11, %c0_12, %c0_13] : memref<1x8x512xf32, #tpu.memory_space<vmem>>, vector<1x8x512xf32>
    %46 = vector.shape_cast %45 : vector<1x8x512xf32> to vector<8x512xf32>
    %47 = vector.shape_cast %44 : vector<8x512xf32> to vector<1x8x512xf32>
    tpu.vector_store %arg6[%c0_11, %c0_12, %c0_13], %47 {strides = array<i32>} : memref<1x8x512xf32, #tpu.memory_space<vmem>>, vector<1x8x512xf32>,
    return
  }
  func.func @transform_0(%arg0: i32, %arg1: i32) -> (i32, i32, i32) {
    %c0_i32 = arith.constant 0 : i32
    %c0_i32_0 = arith.constant 0 : i32
    return %arg0, %c0_i32, %arg1 : i32, i32, i32
  }
  func.func @transform_1(%arg0: i32, %arg1: i32) -> (i32, i32, i32) {
    %c1_i32 = arith.constant 1 : i32
    %0 = arith.addi %arg1, %c1_i32 : i32
    %c2_i32 = arith.constant 2 : i32
    %1 = arith.muli %0, %c2_i32 : i32
    %c0_i32 = arith.constant 0 : i32
    %c0_i32_0 = arith.constant 0 : i32
    return %arg0, %c0_i32, %1 : i32, i32, i32
  }
  func.func @transform_2(%arg0: i32, %arg1: i32) -> (i32, i32) {
    %c0_i32 = arith.constant 0 : i32
    %c0_i32_0 = arith.constant 0 : i32
    %c0_i32_1 = arith.constant 0 : i32
    return %c0_i32, %c0_i32_0 : i32, i32
  }
  func.func @transform_3(%arg0: i32, %arg1: i32) -> (i32, i32) {
    %c0_i32 = arith.constant 0 : i32
    %c0_i32_0 = arith.constant 0 : i32
    %c0_i32_1 = arith.constant 0 : i32
    return %c0_i32, %c0_i32_0 : i32, i32
  }
  func.func @transform_4(%arg0: i32, %arg1: i32) -> (i32, i32, i32) {
    %c0_i32 = arith.constant 0 : i32
    %c0_i32_0 = arith.constant 0 : i32
    return %arg0, %c0_i32, %arg1 : i32, i32, i32
  }
}

</mosaic_0001>

<bundles_post_ra>
// kernel: conv_block_forward.1
= control target key start
LH: loop header
LB: loop body
LE: loop exit
PB: predicated region body
PF: predicated region fallthrough
CT: control target
= control target key end

     0   :  { %s1786_s15 = smov 0   ;;  %s1788_s16 = smov 0   ;;  %s2226_s0 = inlined_call_operand.vmem [shape: f32[2,4,1280], index: 0, kind: input, shape index: {}, may-alias: {0,1}]   ;;  %s2227_s1 = inlined_call_operand.vmem [shape: f32[2,4,1280], index: 1, kind: input, shape index: {}, may-alias: {0,1}]   ;;  %s2228_s2 = inlined_call_operand.vmem [shape: f32[8,108], index: 2, kind: input, shape index: {}]   ;;  %s2229_s3 = inlined_call_operand.vmem [shape: f32[8,1], index: 3, kind: input, shape index: {}]   ;;  %s2230_s4 = inlined_call_operand.vmem [shape: f32[2,8,1024], index: 4, kind: output, shape index: {}]  }
   0x1   :  { %s1790_s17 = smov 0   ;;  %s1792_s18 = smov 0  }
   0x2   :  { %s1794_s19 = smov 0  }
   0x3 LB: > { %s23_s20 = sadd.s32 1, %s1725_s17  ;;  %s26_s21 = sadd.s32 1, %s1729_s18  ;;  %s1733_s19 = sphi %s1794_s19, %s14_s19   ;;  %s1729_s18 = sphi %s1792_s18, %s2236_s18   ;;  %s1725_s17 = sphi %s1790_s17, %s2235_s17   ;;  %s1721_s16 = sphi %s1788_s16, %s2234_s16   ;;  %s1717_s15 = sphi %s1786_s15, %s2233_s15  }
   0x4   : > { %p24_p0 = scmp.ge.s32.totalorder %s23_s20, 2  ;;  %p1232_p1 = scmp.ge.s32.totalorder %s1733_s19, 1 }
   0x5   : > { %p216_p2 = scmp.lt.s32.totalorder %s1733_s19, 5 }
   0x6   : > { %s2238_s20 = smov (%p24_p0, %s23_s20), 0  ;;  %s2240_s21 = smov (!%p24_p0, %s26_s21), %s1729_s18 }
   0x7   : > { %p217_p3 = pnand %p1232_p1, %p216_p2  ;;  %p28_p4 = scmp.ge.s32.totalorder %s2240_s21, 2 }
   0x8   : > { %s1816_s22 = sshll.u32 (!%p217_p3), %s1717_s15, 2  ;;  %p270_p5 = scmp.lt.s32.totalorder (!%p217_p3), %s1721_s16, 1  ;;  %vm333_vm0 = vcmask (!%p217_p3), 1039360   ;;  %vm673_vm1 = vcmask (!%p217_p3), 392192   ;;  %vm652_vm2 = vcmask (!%p217_p3), 400384   ;;  %vm608_vm3 = vcmask (!%p217_p3), 1043456  }
   0x9   : > { %s2242_s21 = smov (%p28_p4, %s2240_s21), 0  ;;  %220 = sbr.rel (%p217_p3) target bundleno = 550 (0x226), region = 36 }
   0xa   : > { %p272_p6 = scmp.lt.s32.totalorder (!%p217_p3), %s1816_s22, 9  ;;  %s1257_s25 = sadd.s32 (!%p217_p3), 4, %s1816_s22  ;;  %vm693_vm4 = vcmask (!%p217_p3), 384000   ;;  %vm713_vm5 = vcmask (!%p217_p3), 318464   ;;  %vm733_vm6 = vcmask (!%p217_p3), 310272   ;;  %vm753_vm7 = vcmask (!%p217_p3), 302080  }
   0xb   : > { %p288_p7 = scmp.lt.s32.totalorder (!%p217_p3), %s1257_s25, 9  ;;  %s1735_s10 = smov (!%p217_p3), 49   ;;  %vm485_vm8 = vcmask (!%p217_p3), 228352   ;;  %vm773_vm9 = vcmask (!%p217_p3), 236544   ;;  %vm504_vm10 = vcmask (!%p217_p3), 220160   ;;  %vm352_vm11 = vcmask (!%p217_p3), 1031168  }
   0xc   : > { %s1736_s11 = smov (!%p217_p3), 127   ;;  %s1737_s12 = smov (!%p217_p3), 48   ;;  %vm371_vm12 = vcmask (!%p217_p3), 965632   ;;  %vm409_vm13 = vcmask (!%p217_p3), 949248   ;;  %vm390_vm14 = vcmask (!%p217_p3), 957440   ;;  %vm428_vm15 = vcmask (!%p217_p3), 883712  }
   0xd   : > { %s1738_s13 = smov (!%p217_p3), 47   ;;  %s1739_s14 = smov (!%p217_p3), 39  }
   0xe   : > { %s1740_s15 = smov (!%p217_p3), 38   ;;  %s1746_s28 = smov (!%p217_p3), 118  }
   0xf   : > { %s1747_s29 = smov (!%p217_p3), 117   ;;  %s1751_s7 = smov (!%p217_p3), 106  }
  0x10   : > { %s2244_s16 = smov (!%p270_p5, %s1721_s16), 1  ;;  %s2246_s25 = smov (!%p288_p7, %s1257_s25), 9 }
  0x11   : > { %s273_s23 = scalar_select %p272_p6, %s1816_s22, 9 }
  0x12   : > { %s1318_s24 = smul.u32 10, %s2244_s16  ;;  %s1752_s8 = smov 26  }
  0x13   : > { %p300_p8 = scmp.lt.s32.totalorder %s1816_s22, 7 }
  0x14   : > { %s275_s26 = sadd.s32 %s1318_s24, %s273_s23  ;;  %s291_s5 = sadd.s32 %s1318_s24, %s2246_s25 }
  0x15   : > { %s1234_s27 = sshll.u32 %s275_s26, 2  ;;  %s1237_s6 = sshll.u32 %s291_s5, 2 }
  0x16   : > { %s277_s30 = scalar_lea.vmem %s2226_s0, %s1234_s27  ;;  %s293_s9 = scalar_lea.vmem %s2227_s1, %s1237_s6 }
  0x17   : > { %v1827_v0 = vld [vmem:[%s277_s30] sm:$0xff]  ;;  %v1829_v1 = vld [vmem:[%s277_s30 + $0x8] sm:$0xff]  ;;  %s1741_s23 = smov 37   ;;  %s1742_s24 = smov 28  }
  0x18   : > { %v1833_v2 = vcombine.high %v1827_v0, %v1827_v0  ;;  %v320_v3 = vrot.slane %v1829_v1, 4  ;;  %v1838_v4 = vcombine.high %v1829_v1, %v1829_v1  ;;  %v1852_v7 = vld [vmem:[%s293_s9] sm:$0xff]  ;;  %v1869_v12 = vrot.slane %v1827_v0, 4  ;;  %s1743_s25 = smov 29   ;;  %s1744_s26 = smov 27  }
  0x19   : > { %v322_v9 = vrot.slane %v1852_v7, 4  ;;  %v317_v11 = vcombine.high %v1852_v7, %v1852_v7  ;;  %s1745_s27 = smov 126   ;;  %s1748_s30 = smov 116  }
  0x1a   : > { %v1842_v5 = vpack.i.bf16 %v1829_v1, %v1833_v2  ;;  %v1845_v6 = vpack.i.bf16 %v320_v3, %v1833_v2  ;;  %v1856_v8 = vpack.i.bf16 %v1852_v7, %v1838_v4  ;;  %s1749_s5 = smov 108   ;;  %s1750_s6 = smov 107  }
  0x1b   : > { %v1860_v10 = vpack.i.bf16 %v322_v9, %v1838_v4  ;;  %v1475_v13 = vpack.i.bf16 %v1869_v12, %v317_v11  ;;  %v1490_v14 = vpack.i.bf16 %v1827_v0, %v317_v11  ;;  %s1753_s9 = smov 18   ;;  %s2248_s22 = smov (!%p300_p8, %s1816_s22), 7 }
  0x1c   : > { %1396 = vrot.lane.b32.xlu1 %v1842_v5, %s1735_s10  ;;  %1386 = vrot.lane.b32.xlu0 %v1845_v6, %s1736_s11 }
  0x20   : > { %1401 = vrot.lane.b32.xlu1 %v1856_v8, %s1735_s10  ;;  %1391 = vrot.lane.b32.xlu0 %v1860_v10, %s1736_s11 }
  0x24   : > { %1406 = vrot.lane.b32.xlu1 %v1845_v6, %s1737_s12  ;;  %650 = vrot.lane.b32.xlu0 %v317_v11, %s1735_s10  ;;  %s1754_s10 = smov 17  }
  0x28   : > { %671 = vrot.lane.b32.xlu1 %v317_v11, %s1737_s12  ;;  %1411 = vrot.lane.b32.xlu0 %v1860_v10, %s1737_s12  ;;  %s1756_s12 = smov 8  }
  0x2c   : > { %1416 = vrot.lane.b32.xlu1 %v1842_v5, %s1738_s13  ;;  %323 = vrot.lane.b32.xlu0 %v1869_v12, %s1736_s11  ;;  %s1755_s11 = smov 16  }
  0x30   : > { %691 = vrot.lane.b32.xlu1 %v317_v11, %s1738_s13  ;;  %1421 = vrot.lane.b32.xlu0 %v1856_v8, %s1738_s13  ;;  %s1757_s13 = smov 7  }
  0x34   : > { %1431 = vrot.lane.b32.xlu1 %v1860_v10, %s1739_s14  ;;  %1426 = vrot.lane.b32.xlu0 %v1845_v6, %s1739_s14 }
  0x38   : > { %1436 = vrot.lane.b32.xlu1 %v1842_v5, %s1740_s15  ;;  %711 = vrot.lane.b32.xlu0 %v317_v11, %s1739_s14 }
  0x3c   : > { %731 = vrot.lane.b32.xlu1 %v317_v11, %s1740_s15  ;;  %1441 = vrot.lane.b32.xlu0 %v1856_v8, %s1740_s15 }
  0x40   : > { %1451 = vrot.lane.b32.xlu1 %v1860_v10, %s1741_s23  ;;  %1446 = vrot.lane.b32.xlu0 %v1845_v6, %s1741_s23 }
  0x44   : > { %1456 = vrot.lane.b32.xlu1 %v1845_v6, %s1742_s24  ;;  %751 = vrot.lane.b32.xlu0 %v317_v11, %s1741_s23 }
  0x48   : > { %1466 = vrot.lane.b32.xlu1 %v1842_v5, %s1743_s25  ;;  %1461 = vrot.lane.b32.xlu0 %v1860_v10, %s1742_s24 }
  0x4c   : > { %771 = vrot.lane.b32.xlu1 %v317_v11, %s1743_s25  ;;  %1471 = vrot.lane.b32.xlu0 %v1856_v8, %s1743_s25  ;;  %s1239_s25 = sshll.u32 %s2244_s16, 3 }
  0x50   : > { %1481 = vrot.lane.b32.xlu1 %v1842_v5, %s1744_s26  ;;  %1476 = vrot.lane.b32.xlu0 %v1475_v13, %s1742_s24 }
  0x54   : > { %1491 = vrot.lane.b32.xlu1 %v1490_v14, %s1744_s26  ;;  %1486 = vrot.lane.b32.xlu0 %v1856_v8, %s1744_s26  ;;  %s303_s26 = sadd.s32 %s1239_s25, %s2248_s22 }
  0x58   : > { %1501 = vrot.lane.b32.xlu1 %v1856_v8, %s1745_s27  ;;  %1496 = vrot.lane.b32.xlu0 %v1842_v5, %s1745_s27 }
  0x5c   : > { %1511 = vrot.lane.b32.xlu1 %v1860_v10, %s1746_s28  ;;  %1506 = vrot.lane.b32.xlu0 %v1845_v6, %s1746_s28 }
  0x60   : > { %361 = vrot.lane.b32.xlu1 %v1869_v12, %s1746_s28  ;;  %342 = vrot.lane.b32.xlu0 %v1827_v0, %s1745_s27  ;;  %s1240_s27 = sshll.u32 %s303_s26, 3 }
  0x64   : > { %1521 = vrot.lane.b32.xlu1 %v1856_v8, %s1747_s29  ;;  %1516 = vrot.lane.b32.xlu0 %v1842_v5, %s1747_s29 }
  0x68   : > { %1531 = vrot.lane.b32.xlu1 %v1860_v10, %s1748_s30  ;;  %1526 = vrot.lane.b32.xlu0 %v1845_v6, %s1748_s30 }
  0x6c   : > { %1541 = vrot.lane.b32.xlu1 %v1856_v8, %s1749_s5  ;;  %1536 = vrot.lane.b32.xlu0 %v1842_v5, %s1749_s5 }
  0x70   : > { %1551 = vrot.lane.b32.xlu1 %v1860_v10, %s1750_s6  ;;  %1546 = vrot.lane.b32.xlu0 %v1845_v6, %s1750_s6 }
  0x74   : > { %399 = vrot.lane.b32.xlu1 %v1869_v12, %s1748_s30  ;;  %380 = vrot.lane.b32.xlu0 %v1827_v0, %s1747_s29  ;;  %s305_s30 = scalar_lea.vmem %s2230_s4, %s1240_s27 }
  0x78   : > { %437 = vrot.lane.b32.xlu1 %v1869_v12, %s1750_s6  ;;  %418 = vrot.lane.b32.xlu0 %v1827_v0, %s1749_s5 }
  0x7c   : > { %1561 = vrot.lane.b32.xlu1 %v1856_v8, %s1751_s7  ;;  %1556 = vrot.lane.b32.xlu0 %v1842_v5, %s1751_s7 }
  0x80   : > { %1571 = vrot.lane.b32.xlu1 %v1860_v10, %s1752_s8  ;;  %1566 = vrot.lane.b32.xlu0 %v1845_v6, %s1752_s8 }
  0x84   : > { %513 = vrot.lane.b32.xlu1 %v1869_v12, %s1752_s8  ;;  %456 = vrot.lane.b32.xlu0 %v1827_v0, %s1751_s7 }
  0x88   : > { %1581 = vrot.lane.b32.xlu1 %v1856_v8, %s1753_s9  ;;  %1576 = vrot.lane.b32.xlu0 %v1842_v5, %s1753_s9 }
  0x8c   : > { %1591 = vrot.lane.b32.xlu1 %v1860_v10, %s1754_s10  ;;  %1586 = vrot.lane.b32.xlu0 %v1845_v6, %s1754_s10 }
  0x8e   : > { %v1916_v15 = vpop.permute.xlu1 %1396  ;;  %v1387_v16 = vpop.permute.xlu0 %1386 }
  0x8f   : > { %v1389_v21 = vunpack.i.h.bf16 %v1387_v16  ;;  %v1388_v22 = vunpack.i.l.bf16 %v1387_v16  ;;  %v1399_v26 = vunpack.i.h.bf16 %v1916_v15  ;;  %v1398_v37 = vunpack.i.l.bf16 %v1916_v15 }
  0x90   : > { %1601 = vrot.lane.b32.xlu1 %v1856_v8, %s1755_s11  ;;  %1596 = vrot.lane.b32.xlu0 %v1842_v5, %s1755_s11 }
  0x91   : > { %v335_v31 = vsel %vm333_vm0, %v1388_v22, %v1389_v21  ;;  %v653_v57 = vsel %vm652_vm2, %v1398_v37, %v1399_v26 }
  0x92   : > { %v1402_v17 = vpop.permute.xlu1 %1401  ;;  %v1392_v18 = vpop.permute.xlu0 %1391  ;;  %v1947_v42 = vsel %vm608_vm3, %v1833_v2, %v335_v31 }
  0x93   : > { %v1394_v19 = vunpack.i.h.bf16 %v1392_v18  ;;  %v1393_v20 = vunpack.i.l.bf16 %v1392_v18  ;;  %v1404_v27 = vunpack.i.h.bf16 %v1402_v17  ;;  %v1403_v28 = vunpack.i.l.bf16 %v1402_v17 }
  0x94   : > { %1611 = vrot.lane.b32.xlu1 %v1860_v10, %s1756_s12  ;;  %1606 = vrot.lane.b32.xlu0 %v1845_v6, %s1756_s12 }
  0x95   : > { %v337_v25 = vsel %vm333_vm0, %v1393_v20, %v1394_v19  ;;  %v336_v29 = vsel %vm333_vm0, %v1389_v21, %v1393_v20  ;;  %v791_v36 = vsel %vm608_vm3, %v1852_v7, %v1394_v19  ;;  %v655_v43 = vsel %vm652_vm2, %v1403_v28, %v1404_v27 }
  0x96   : > { %v1407_v23 = vpop.permute.xlu1 %1406  ;;  %v651_v24 = vpop.permute.xlu0 %650  ;;  %v1932_v35 = vsel %vm608_vm3, %v1838_v4, %v337_v25  ;;  %v1940_v40 = vsel %vm608_vm3, %v1829_v1, %v336_v29  ;;  %v654_v44 = vsel %vm652_vm2, %v1399_v26, %v1403_v28 }
  0x97   : > { %v1409_v32 = vunpack.i.h.bf16 %v1407_v23  ;;  %v1408_v33 = vunpack.i.l.bf16 %v1407_v23  ;;  %v656_v41 = vsel %vm652_vm2, %v1404_v27, %v651_v24  ;;  %v1620_v49 = vpack.i.bf16 %v791_v36, %v1932_v35 }
  0x98   : > { %551 = vrot.lane.b32.xlu1 %v1869_v12, %s1754_s10  ;;  %532 = vrot.lane.b32.xlu0 %v1827_v0, %s1753_s9  ;;  %v1615_v52 = vpack.i.bf16 %v1940_v40, %v1947_v42  ;;  %vm523_vm2 = vcmask 211968  }
  0x99   : > { %v674_v50 = vsel %vm673_vm1, %v1408_v33, %v1409_v32  ;;  %v792_v5 = vsel %vm608_vm3, %v1398_v37, %v1408_v33 }
  0x9a   : > { %v672_v30 = vpop.permute.xlu1 %671  ;;  %v1412_v34 = vpop.permute.xlu0 %1411  ;;  %v793_v60 = vsel %vm608_vm3, %v653_v57, %v674_v50 }
  0x9b   : > { %v1414_v38 = vunpack.i.h.bf16 %v1412_v34  ;;  %v1413_v39 = vunpack.i.l.bf16 %v1412_v34 }
  0x9c   : > { %589 = vrot.lane.b32.xlu1 %v1869_v12, %s1756_s12  ;;  %570 = vrot.lane.b32.xlu0 %v1827_v0, %s1755_s11 }
  0x9d   : > { %v677_v45 = vsel %vm673_vm1, %v1414_v38, %v672_v30  ;;  %v675_v46 = vsel %vm673_vm1, %v1409_v32, %v1413_v39  ;;  %v676_v47 = vsel %vm673_vm1, %v1413_v39, %v1414_v38  ;;  %vm466_vm1 = vcmask 867328  }
  0x9e   : > { %v1954_v48 = vpop.permute.xlu1 %1416  ;;  %v324_v51 = vpop.permute.xlu0 %323  ;;  %v795_v53 = vsel %vm608_vm3, %v655_v43, %v676_v47  ;;  %v796_v54 = vsel %vm608_vm3, %v656_v41, %v677_v45  ;;  %v794_v55 = vsel %vm608_vm3, %v654_v44, %v675_v46 }
  0x9f   : > { %v334_v56 = vsel %vm333_vm0, %v324_v51, %v1388_v22  ;;  %v1630_v59 = vpack.i.bf16 %v796_v54, %v795_v53  ;;  %v1625_v62 = vpack.i.bf16 %v794_v55, %v793_v60  ;;  %v1419_v1 = vunpack.i.h.bf16 %v1954_v48 }
  0xa0   : > { %1621 = vrot.lane.b32.xlu1 %v1620_v49, %s1757_s13  ;;  %1616 = vrot.lane.b32.xlu0 %v1615_v52, %s1757_s13  ;;  %v1970_v63 = vsel %vm608_vm3, %v1827_v0, %v334_v56  ;;  %v1418_v2 = vunpack.i.l.bf16 %v1954_v48  ;;  %vm447_vm0 = vcmask 875520  }
  0xa1   : > { %v1635_v9 = vpack.i.bf16 %v792_v5, %v1970_v63 }
  0xa2   : > { %v692_v58 = vpop.permute.xlu1 %691  ;;  %v1422_v61 = vpop.permute.xlu0 %1421  ;;  %v694_v12 = vsel %vm693_vm4, %v1418_v2, %v1419_v1 }
  0xa3   : > { %v1423_v3 = vunpack.i.l.bf16 %v1422_v61  ;;  %v1424_v0 = vunpack.i.h.bf16 %v1422_v61 }
  0xa4   : > { %1631 = vrot.lane.b32.xlu1 %v1630_v59, %s1757_s13  ;;  %1626 = vrot.lane.b32.xlu0 %v1625_v62, %s1757_s13 }
  0xa5   : > { %v695_v13 = vsel %vm693_vm4, %v1419_v1, %v1423_v3  ;;  %v696_v21 = vsel %vm693_vm4, %v1423_v3, %v1424_v0  ;;  %v697_v22 = vsel %vm693_vm4, %v1424_v0, %v692_v58  ;;  %vm561_vm4 = vcmask 138240  }
  0xa6   : > { %v1432_v4 = vpop.permute.xlu1 %1431  ;;  %v1427_v8 = vpop.permute.xlu0 %1426 }
  0xa7   : > { %v1434_v6 = vunpack.i.h.bf16 %v1432_v4  ;;  %v1433_v7 = vunpack.i.l.bf16 %v1432_v4  ;;  %v1429_v10 = vunpack.i.h.bf16 %v1427_v8  ;;  %v1428_v11 = vunpack.i.l.bf16 %v1427_v8 }
  0xa8   : > { %1636 = vrot.lane.b32.xlu0 %v1635_v9, %s1757_s13 }
  0xa9   : > { %v714_v15 = vsel %vm713_vm5, %v1428_v11, %v1429_v10  ;;  %v715_v16 = vsel %vm713_vm5, %v1429_v10, %v1433_v7  ;;  %v716_v17 = vsel %vm713_vm5, %v1433_v7, %v1434_v6  ;;  %v797_v3 = vsel %vm608_vm3, %v1418_v2, %v1428_v11 }
  0xaa   : > { %v1437_v14 = vpop.permute.xlu1 %1436  ;;  %v712_v18 = vpop.permute.xlu0 %711  ;;  %v798_v19 = vsel %vm608_vm3, %v694_v12, %v714_v15  ;;  %v799_v20 = vsel %vm608_vm3, %v695_v13, %v715_v16  ;;  %v800_v26 = vsel %vm608_vm3, %v696_v21, %v716_v17 }
  0xab   : > { %v717_v23 = vsel %vm713_vm5, %v1434_v6, %v712_v18  ;;  %v1640_v24 = vpack.i.bf16 %v799_v20, %v798_v19  ;;  %v1439_v30 = vunpack.i.h.bf16 %v1437_v14  ;;  %v1438_v31 = vunpack.i.l.bf16 %v1437_v14 }
  0xac   : > { %v801_v25 = vsel %vm608_vm3, %v697_v22, %v717_v23  ;;  %vm542_vm5 = vcmask 146432  }
  0xad   : > { %1641 = vrot.lane.b32.xlu1 %v1640_v24, %s1757_s13  ;;  %v1645_v28 = vpack.i.bf16 %v801_v25, %v800_v26  ;;  %v734_v43 = vsel %vm733_vm6, %v1438_v31, %v1439_v30 }
  0xae   : > { %v732_v27 = vpop.permute.xlu1 %731  ;;  %v1442_v29 = vpop.permute.xlu0 %1441 }
  0xaf   : > { %1646 = vrot.lane.b32.xlu0 %v1645_v28, %s1757_s13  ;;  %v1443_v32 = vunpack.i.l.bf16 %v1442_v29  ;;  %v1444_v38 = vunpack.i.h.bf16 %v1442_v29 }
  0xb1   : > { %v735_v44 = vsel %vm733_vm6, %v1439_v30, %v1443_v32  ;;  %v736_v53 = vsel %vm733_vm6, %v1443_v32, %v1444_v38  ;;  %v737_v54 = vsel %vm733_vm6, %v1444_v38, %v732_v27  ;;  %vm580_vm6 = vcmask 130048  }
  0xb2   : > { %v1452_v33 = vpop.permute.xlu1 %1451  ;;  %v1447_v37 = vpop.permute.xlu0 %1446 }
  0xb3   : > { %v1454_v34 = vunpack.i.h.bf16 %v1452_v33  ;;  %v1453_v36 = vunpack.i.l.bf16 %v1452_v33  ;;  %v1449_v39 = vunpack.i.h.bf16 %v1447_v37  ;;  %v1448_v41 = vunpack.i.l.bf16 %v1447_v37 }
  0xb5   : > { %v754_v46 = vsel %vm753_vm7, %v1448_v41, %v1449_v39  ;;  %v755_v47 = vsel %vm753_vm7, %v1449_v39, %v1453_v36  ;;  %v756_v49 = vsel %vm753_vm7, %v1453_v36, %v1454_v34  ;;  %v802_v59 = vsel %vm608_vm3, %v1438_v31, %v1448_v41 }
  0xb6   : > { %v1457_v45 = vpop.permute.xlu1 %1456  ;;  %v752_v50 = vpop.permute.xlu0 %751  ;;  %v803_v51 = vsel %vm608_vm3, %v734_v43, %v754_v46  ;;  %v804_v52 = vsel %vm608_vm3, %v735_v44, %v755_v47  ;;  %v805_v58 = vsel %vm608_vm3, %v736_v53, %v756_v49  ;;  %v1660_v7 = vpack.i.bf16 %v802_v59, %v797_v3 }
  0xb7   : > { %v757_v55 = vsel %vm753_vm7, %v1454_v34, %v752_v50  ;;  %v1650_v56 = vpack.i.bf16 %v804_v52, %v803_v51  ;;  %v1459_v62 = vunpack.i.h.bf16 %v1457_v45  ;;  %v2010_v4 = vunpack.i.l.bf16 %v1457_v45 }
  0xb8   : > { %v806_v57 = vsel %vm608_vm3, %v737_v54, %v757_v55  ;;  %v1758_v43 = vmov 0.0   ;;  %v1759_v52 = vmov 0   ;;  %vm599_vm7 = vcmask 64512  }
  0xb9   : > { %1651 = vrot.lane.b32.xlu1 %v1650_v56, %s1757_s13  ;;  %v1655_v61 = vpack.i.bf16 %v806_v57, %v805_v58  ;;  %v2018_v48 = vsel %vm485_vm8, %v2010_v4, %v1459_v62  ;;  %1095 = vmatprep.mubr.f32.mxu1 %v1758_v43 }
  0xba   : > { %v2005_v60 = vpop.permute.xlu1 %1466  ;;  %v1462_v1 = vpop.permute.xlu0 %1461  ;;  %1024 = vmatprep.mubr.f32.mxu0 %v1758_v43  ;;  %1690 = vset.pattern.permute.xlu1 %v1759_v52 }
  0xbb   : > { %v1469_v5 = vunpack.i.h.bf16 %v2005_v60  ;;  %v1468_v6 = vunpack.i.l.bf16 %v2005_v60  ;;  %1656 = vrot.lane.b32.xlu0 %v1655_v61, %s1757_s13  ;;  %v1463_v8 = vunpack.i.l.bf16 %v1462_v1  ;;  %v1464_v12 = vunpack.i.h.bf16 %v1462_v1  ;;  %v943_v60 = vld [vmem:[%s2229_s3] sm:$0xff] }
  0xbc   : > { %1691 = vset.pattern.permute.xlu0 %v1759_v52 }
  0xbd   : > { %1661 = vrot.lane.b32.xlu1 %v1660_v7, %s1757_s13  ;;  %v774_v2 = vsel %vm773_vm9, %v1468_v6, %v1469_v5  ;;  %v2022_v13 = vsel %vm485_vm8, %v1459_v62, %v1463_v8  ;;  %v2034_v23 = vsel %vm485_vm8, %v1463_v8, %v1464_v12  ;;  %v807_v54 = vsel %vm608_vm3, %v1468_v6, %v2010_v4 }
  0xbe   : > { %v772_v9 = vpop.permute.xlu1 %771  ;;  %v1472_v0 = vpop.permute.xlu0 %1471  ;;  %v808_v17 = vsel %vm608_vm3, %v774_v2, %v2018_v48 }
  0xbf   : > { %v1474_v10 = vunpack.i.h.bf16 %v1472_v0  ;;  %v1473_v11 = vunpack.i.l.bf16 %v1472_v0 }
  0xc1   : > { %v775_v14 = vsel %vm773_vm9, %v1469_v5, %v1473_v11  ;;  %v776_v19 = vsel %vm773_vm9, %v1473_v11, %v1474_v10  ;;  %v777_v24 = vsel %vm773_vm9, %v1474_v10, %v772_v9  ;;  %vm1760_vm9 = vmmov 1  }
  0xc2   : > { %v1482_v15 = vpop.permute.xlu1 %1481  ;;  %v2025_v16 = vpop.permute.xlu0 %1476  ;;  %v809_v18 = vsel %vm608_vm3, %v775_v14, %v2022_v13  ;;  %v810_v30 = vsel %vm608_vm3, %v776_v19, %v2034_v23 }
  0xc3   : > { %v1484_v20 = vunpack.i.h.bf16 %v1482_v15  ;;  %v1478_v21 = vunpack.i.l.bf16 %v2025_v16  ;;  %v1665_v22 = vpack.i.bf16 %v809_v18, %v808_v17  ;;  %v2037_v25 = vunpack.i.l.bf16 %v1482_v15 }
  0xc5   : > { %v785_v26 = vsel %vm485_vm8, %v1464_v12, %v1478_v21  ;;  %1666 = vrot.lane.b32.xlu0 %v1665_v22, %s1757_s13  ;;  %v2049_v36 = vsel %vm504_vm10, %v2037_v25, %v1484_v20  ;;  %v1685_v58 = vpack.i.bf16 %v2037_v25, %v807_v54 }
  0xc6   : > { %v2041_v27 = vpop.permute.xlu1 %1491  ;;  %v1487_v29 = vpop.permute.xlu0 %1486  ;;  %v811_v31 = vsel %vm608_vm3, %v777_v24, %v785_v26 }
  0xc7   : > { %v1493_v28 = vunpack.i.l.bf16 %v2041_v27  ;;  %v1489_v32 = vunpack.i.h.bf16 %v1487_v29  ;;  %v1488_v33 = vunpack.i.l.bf16 %v1487_v29  ;;  %v1670_v34 = vpack.i.bf16 %v811_v31, %v810_v30 }
  0xc9   : > { %1671 = vrot.lane.b32.xlu1 %v1670_v34, %s1757_s13  ;;  %v2053_v38 = vsel %vm504_vm10, %v1484_v20, %v1488_v33  ;;  %v2056_v39 = vsel %vm504_vm10, %v1488_v33, %v1489_v32  ;;  %v790_v41 = vsel %vm504_vm10, %v1489_v32, %v1493_v28 }
  0xca   : > { %v1502_v37 = vpop.permute.xlu1 %1501  ;;  %v1497_v46 = vpop.permute.xlu0 %1496  ;;  %v1675_v47 = vpack.i.bf16 %v2053_v38, %v2049_v36  ;;  %v1680_v49 = vpack.i.bf16 %v790_v41, %v2056_v39 }
  0xcb   : > { %v1504_v44 = vunpack.i.h.bf16 %v1502_v37  ;;  %v1503_v45 = vunpack.i.l.bf16 %v1502_v37  ;;  %v1499_v50 = vunpack.i.h.bf16 %v1497_v46  ;;  %v1498_v51 = vunpack.i.l.bf16 %v1497_v46 }
  0xcc   : > { %1676 = vrot.lane.b32.xlu0 %v1675_v47, %s1757_s13 }
  0xcd   : > { %1681 = vrot.lane.b32.xlu1 %v1680_v49, %s1757_s13  ;;  %v356_v59 = vsel %vm352_vm11, %v1503_v45, %v1504_v44  ;;  %v354_v1 = vsel %vm352_vm11, %v1498_v51, %v1499_v50  ;;  %v355_v3 = vsel %vm352_vm11, %v1499_v50, %v1503_v45 }
  0xce   : > { %v1512_v53 = vpop.permute.xlu1 %1511  ;;  %v1507_v57 = vpop.permute.xlu0 %1506 }
  0xcf   : > { %v1514_v55 = vunpack.i.h.bf16 %v1512_v53  ;;  %v1513_v56 = vunpack.i.l.bf16 %v1512_v53  ;;  %v1509_v61 = vunpack.i.h.bf16 %v1507_v57  ;;  %v1508_v62 = vunpack.i.l.bf16 %v1507_v57 }
  0xd0   : > { %1686 = vrot.lane.b32.xlu0 %v1685_v58, %s1757_s13 }
  0xd1   : > { %v375_v5 = vsel %vm371_vm12, %v1513_v56, %v1514_v55  ;;  %v373_v7 = vsel %vm371_vm12, %v1508_v62, %v1509_v61  ;;  %v374_v9 = vsel %vm371_vm12, %v1509_v61, %v1513_v56  ;;  %946 = vperm.xlu1 %1690, %v943_v60  }
  0xd2   : > { %v362_v6 = vpop.permute.xlu1 %361  ;;  %v616_v8 = vsel %vm608_vm3, %v356_v59, %v375_v5  ;;  %v343_v2 = vpop.permute.xlu0 %342  ;;  %v614_v10 = vsel %vm608_vm3, %v354_v1, %v373_v7  ;;  %v615_v12 = vsel %vm608_vm3, %v355_v3, %v374_v9 }
  0xd3   : > { %v372_v0 = vsel %vm371_vm12, %v362_v6, %v1508_v62  ;;  %v1288_v11 = vpack.c.bf16 %v616_v8, %v1932_v35  ;;  %v353_v14 = vsel %vm352_vm11, %v343_v2, %v1498_v51  ;;  %v1258_v15 = vpack.c.bf16 %v614_v10, %v1947_v42 }
  0xd4   : > { %v1290_v17 = vpack.c.bf16 %v615_v12, %v1940_v40  ;;  %v613_v18 = vsel %vm608_vm3, %v353_v14, %v372_v0 }
  0xd5   : > { %1289 = vmatprep.subr.bf16.mxu1 %v1288_v11  ;;  %1259 = vmatprep.subr.bf16.mxu0 %v1258_v15  ;;  %v1260_v20 = vpack.c.bf16 %v613_v18, %v1970_v63 }
  0xd6   : > { %v1522_v19 = vpop.permute.xlu1 %1521  ;;  %1291 = vmatpush1.bf16.msra.mxu1 %v1290_v17  ;;  %v1517_v21 = vpop.permute.xlu0 %1516 }
  0xd7   : > { %1261 = vmatpush1.bf16.msra.mxu0 %v1260_v20  ;;  %v1524_v24 = vunpack.i.h.bf16 %v1522_v19  ;;  %v1523_v26 = vunpack.i.l.bf16 %v1522_v19  ;;  %v1519_v42 = vunpack.i.h.bf16 %v1517_v21  ;;  %v1518_v40 = vunpack.i.l.bf16 %v1517_v21 }
  0xd9   : > { %v394_v43 = vsel %vm390_vm14, %v1523_v26, %v1524_v24  ;;  %v392_v46 = vsel %vm390_vm14, %v1518_v40, %v1519_v42  ;;  %v393_v49 = vsel %vm390_vm14, %v1519_v42, %v1523_v26 }
  0xda   : > { %v1532_v22 = vpop.permute.xlu1 %1531  ;;  %v1527_v35 = vpop.permute.xlu0 %1526 }
  0xdb   : > { %v1534_v28 = vunpack.i.h.bf16 %v1532_v22  ;;  %v1533_v29 = vunpack.i.l.bf16 %v1532_v22  ;;  %v1529_v30 = vunpack.i.h.bf16 %v1527_v35  ;;  %v1528_v31 = vunpack.i.l.bf16 %v1527_v35 }
  0xdd   : > { %v413_v44 = vsel %vm409_vm13, %v1533_v29, %v1534_v28  ;;  %v411_v47 = vsel %vm409_vm13, %v1528_v31, %v1529_v30  ;;  %v412_v50 = vsel %vm409_vm13, %v1529_v30, %v1533_v29  ;;  %v1479_v28 = vunpack.i.h.bf16 %v2025_v16 }
  0xde   : > { %v1542_v32 = vpop.permute.xlu1 %1541  ;;  %v1537_v37 = vpop.permute.xlu0 %1536  ;;  %v620_v55 = vsel %vm608_vm3, %v394_v43, %v413_v44  ;;  %v618_v60 = vsel %vm608_vm3, %v392_v46, %v411_v47  ;;  %v619_v62 = vsel %vm608_vm3, %v393_v49, %v412_v50 }
  0xdf   : > { %v1544_v33 = vunpack.i.h.bf16 %v1542_v32  ;;  %v1543_v34 = vunpack.i.l.bf16 %v1542_v32  ;;  %v1539_v63 = vunpack.i.h.bf16 %v1537_v37  ;;  %v1538_v41 = vunpack.i.l.bf16 %v1537_v37 }
  0xe0   : > { %v486_v16 = vsel %vm485_vm8, %v1479_v28, %v2010_v4  ;;  %vm897_vm8 = vcmask 56320  }
  0xe1   : > { %v432_v51 = vsel %vm428_vm15, %v1543_v34, %v1544_v33  ;;  %v431_v56 = vsel %vm428_vm15, %v1539_v63, %v1543_v34  ;;  %v430_v57 = vsel %vm428_vm15, %v1538_v41, %v1539_v63 }
  0xe2   : > { %v1552_v45 = vpop.permute.xlu1 %1551  ;;  %v1547_v54 = vpop.permute.xlu0 %1546 }
  0xe3   : > { %v1554_v52 = vunpack.i.h.bf16 %v1552_v45  ;;  %v1553_v53 = vunpack.i.l.bf16 %v1552_v45  ;;  %v1549_v58 = vunpack.i.h.bf16 %v1547_v54  ;;  %v1548_v59 = vunpack.i.l.bf16 %v1547_v54 }
  0xe5   : > { %v451_v61 = vsel %vm447_vm0, %v1553_v53, %v1554_v52  ;;  %v449_v3 = vsel %vm447_vm0, %v1548_v59, %v1549_v58  ;;  %v450_v6 = vsel %vm447_vm0, %v1549_v58, %v1553_v53 }
  0xe6   : > { %v400_v1 = vpop.permute.xlu1 %399  ;;  %v624_v5 = vsel %vm608_vm3, %v432_v51, %v451_v61  ;;  %v381_v7 = vpop.permute.xlu0 %380  ;;  %v622_v8 = vsel %vm608_vm3, %v430_v57, %v449_v3  ;;  %v623_v0 = vsel %vm608_vm3, %v431_v56, %v450_v6 }
  0xe7   : > { %v1292_v9 = vpack.c.bf16 %v624_v5, %v620_v55  ;;  %v410_v2 = vsel %vm409_vm13, %v400_v1, %v1528_v31  ;;  %v391_v10 = vsel %vm390_vm14, %v381_v7, %v1518_v40  ;;  %v1262_v11 = vpack.c.bf16 %v622_v8, %v618_v60 }
  0xe8   : > { %v1294_v12 = vpack.c.bf16 %v623_v0, %v619_v62  ;;  %v617_v15 = vsel %vm608_vm3, %v391_v10, %v410_v2  ;;  %v1494_v40 = vunpack.i.h.bf16 %v2041_v27 }
  0xe9   : > { %1293 = vmatprep.subr.bf16.mxu1 %v1292_v9  ;;  %1263 = vmatprep.subr.bf16.mxu0 %v1262_v11 }
  0xea   : > { %v438_v14 = vpop.permute.xlu1 %437  ;;  %1295 = vmatpush1.bf16.msra.mxu1 %v1294_v12  ;;  %v419_v18 = vpop.permute.xlu0 %418  ;;  %v505_v44 = vsel %vm504_vm10, %v1494_v40, %v2037_v25  ;;  %vm2183_vm10 = vmpackc.low %vm608_vm3, %vm1760_vm9 }
  0xeb   : > { %v448_v17 = vsel %vm447_vm0, %v438_v14, %v1548_v59  ;;  %v429_v19 = vsel %vm428_vm15, %v419_v18, %v1538_v41 }
  0xec   : > { %v621_v20 = vsel %vm608_vm3, %v429_v19, %v448_v17 }
  0xed   : > { %v1264_v22 = vpack.c.bf16 %v621_v20, %v617_v15 }
  0xee   : > { %v1562_v21 = vpop.permute.xlu1 %1561  ;;  %v1557_v26 = vpop.permute.xlu0 %1556 }
  0xef   : > { %v1564_v35 = vunpack.i.h.bf16 %v1562_v21  ;;  %v1563_v24 = vunpack.i.l.bf16 %v1562_v21  ;;  %v1559_v29 = vunpack.i.h.bf16 %v1557_v26  ;;  %v1558_v42 = vunpack.i.l.bf16 %v1557_v26  ;;  %1265 = vmatpush1.bf16.msra.mxu0 %v1264_v22 }
  0xf1   : > { %v468_v31 = vsel %vm466_vm1, %v1558_v42, %v1559_v29  ;;  %v470_v32 = vsel %vm466_vm1, %v1563_v24, %v1564_v35  ;;  %v469_v63 = vsel %vm466_vm1, %v1559_v29, %v1563_v24 }
  0xf2   : > { %v1572_v30 = vpop.permute.xlu1 %1571  ;;  %v1567_v37 = vpop.permute.xlu0 %1566  ;;  %v626_v27 = vsel %vm608_vm3, %v468_v31, %v2018_v48  ;;  %v628_v46 = vsel %vm608_vm3, %v470_v32, %v2034_v23  ;;  %v627_v4 = vsel %vm608_vm3, %v469_v63, %v2022_v13 }
  0xf3   : > { %v1574_v33 = vunpack.i.h.bf16 %v1572_v30  ;;  %v1573_v34 = vunpack.i.l.bf16 %v1572_v30  ;;  %v1569_v41 = vunpack.i.h.bf16 %v1567_v37  ;;  %v1568_v43 = vunpack.i.l.bf16 %v1567_v37 }
  0xf5   : > { %v527_v45 = vsel %vm523_vm2, %v1573_v34, %v1574_v33  ;;  %v525_v49 = vsel %vm523_vm2, %v1568_v43, %v1569_v41  ;;  %v526_v51 = vsel %vm523_vm2, %v1569_v41, %v1573_v34 }
  0xf6   : > { %v514_v47 = vpop.permute.xlu1 %513  ;;  %v632_v50 = vsel %vm608_vm3, %v2056_v39, %v527_v45  ;;  %v457_v52 = vpop.permute.xlu0 %456  ;;  %v630_v48 = vsel %vm608_vm3, %v2049_v36, %v525_v49  ;;  %v631_v23 = vsel %vm608_vm3, %v2053_v38, %v526_v51 }
  0xf7   : > { %v524_v25 = vsel %vm523_vm2, %v514_v47, %v1568_v43  ;;  %v1296_v53 = vpack.c.bf16 %v632_v50, %v628_v46  ;;  %v467_v55 = vsel %vm466_vm1, %v457_v52, %v1558_v42  ;;  %v1266_v39 = vpack.c.bf16 %v630_v48, %v626_v27 }
  0xf8   : > { %v629_v54 = vsel %vm608_vm3, %v505_v44, %v524_v25  ;;  %v1298_v56 = vpack.c.bf16 %v631_v23, %v627_v4  ;;  %v625_v57 = vsel %vm608_vm3, %v467_v55, %v486_v16 }
  0xf9   : > { %1297 = vmatprep.subr.bf16.mxu1 %v1296_v53  ;;  %1267 = vmatprep.subr.bf16.mxu0 %v1266_v39  ;;  %v1268_v58 = vpack.c.bf16 %v629_v54, %v625_v57 }
  0xfa   : > { %v1582_v13 = vpop.permute.xlu1 %1581  ;;  %1299 = vmatpush1.bf16.msra.mxu1 %v1298_v56  ;;  %v1577_v59 = vpop.permute.xlu0 %1576 }
  0xfb   : > { %1269 = vmatpush1.bf16.msra.mxu0 %v1268_v58  ;;  %v1584_v61 = vunpack.i.h.bf16 %v1582_v13  ;;  %v1583_v62 = vunpack.i.l.bf16 %v1582_v13  ;;  %v1579_v3 = vunpack.i.h.bf16 %v1577_v59  ;;  %v1578_v5 = vunpack.i.l.bf16 %v1577_v59 }
  0xfd   : > { %v546_v12 = vsel %vm542_vm5, %v1583_v62, %v1584_v61  ;;  %v544_v17 = vsel %vm542_vm5, %v1578_v5, %v1579_v3  ;;  %v545_v19 = vsel %vm542_vm5, %v1579_v3, %v1583_v62 }
  0xfe   : > { %v1592_v36 = vpop.permute.xlu1 %1591  ;;  %v1587_v60 = vpop.permute.xlu0 %1586 }
  0xff   : > { %v1594_v38 = vunpack.i.h.bf16 %v1592_v36  ;;  %v1593_v1 = vunpack.i.l.bf16 %v1592_v36  ;;  %v1589_v6 = vunpack.i.h.bf16 %v1587_v60  ;;  %v1588_v7 = vunpack.i.l.bf16 %v1587_v60 }
 0x101   : > { %v565_v14 = vsel %vm561_vm4, %v1593_v1, %v1594_v38  ;;  %v563_v18 = vsel %vm561_vm4, %v1588_v7, %v1589_v6  ;;  %v564_v20 = vsel %vm561_vm4, %v1589_v6, %v1593_v1 }
 0x102   : > { %v1602_v8 = vpop.permute.xlu1 %1601  ;;  %v1597_v2 = vpop.permute.xlu0 %1596  ;;  %v636_v26 = vsel %vm608_vm3, %v546_v12, %v565_v14  ;;  %v634_v30 = vsel %vm608_vm3, %v544_v17, %v563_v18  ;;  %v635_v32 = vsel %vm608_vm3, %v545_v19, %v564_v20 }
 0x103   : > { %v1604_v9 = vunpack.i.h.bf16 %v1602_v8  ;;  %v1603_v0 = vunpack.i.l.bf16 %v1602_v8  ;;  %v1599_v10 = vunpack.i.h.bf16 %v1597_v2  ;;  %v1598_v11 = vunpack.i.l.bf16 %v1597_v2 }
 0x105   : > { %v584_v24 = vsel %vm580_vm6, %v1603_v0, %v1604_v9  ;;  %v582_v42 = vsel %vm580_vm6, %v1598_v11, %v1599_v10  ;;  %v583_v40 = vsel %vm580_vm6, %v1599_v10, %v1603_v0 }
 0x106   : > { %v1612_v15 = vpop.permute.xlu1 %1611  ;;  %v1607_v35 = vpop.permute.xlu0 %1606 }
 0x107   : > { %v1614_v21 = vunpack.i.h.bf16 %v1612_v15  ;;  %v1613_v22 = vunpack.i.l.bf16 %v1612_v15  ;;  %v1609_v28 = vunpack.i.h.bf16 %v1607_v35  ;;  %v1608_v29 = vunpack.i.l.bf16 %v1607_v35 }
 0x109   : > { %v603_v31 = vsel %vm599_vm7, %v1613_v22, %v1614_v21  ;;  %v601_v34 = vsel %vm599_vm7, %v1608_v29, %v1609_v28  ;;  %v602_v63 = vsel %vm599_vm7, %v1609_v28, %v1613_v22 }
 0x10a   : > { %v552_v33 = vpop.permute.xlu1 %551  ;;  %v640_v37 = vsel %vm608_vm3, %v584_v24, %v603_v31  ;;  %v533_v41 = vpop.permute.xlu0 %532  ;;  %v638_v43 = vsel %vm608_vm3, %v582_v42, %v601_v34  ;;  %v639_v44 = vsel %vm608_vm3, %v583_v40, %v602_v63 }
 0x10b   : > { %v1300_v16 = vpack.c.bf16 %v640_v37, %v636_v26  ;;  %v562_v27 = vsel %vm561_vm4, %v552_v33, %v1588_v7  ;;  %v543_v45 = vsel %vm542_vm5, %v533_v41, %v1578_v5  ;;  %v1270_v46 = vpack.c.bf16 %v638_v43, %v634_v30 }
 0x10c   : > { %v1302_v47 = vpack.c.bf16 %v639_v44, %v635_v32  ;;  %v633_v50 = vsel %vm608_vm3, %v543_v45, %v562_v27 }
 0x10d   : > { %1301 = vmatprep.subr.bf16.mxu1 %v1300_v16  ;;  %1271 = vmatprep.subr.bf16.mxu0 %v1270_v46 }
 0x10e   : > { %v590_v49 = vpop.permute.xlu1 %589  ;;  %1303 = vmatpush1.bf16.msra.mxu1 %v1302_v47  ;;  %v571_v4 = vpop.permute.xlu0 %570 }
 0x10f   : > { %v600_v51 = vsel %vm599_vm7, %v590_v49, %v1608_v29  ;;  %v581_v25 = vsel %vm580_vm6, %v571_v4, %v1598_v11 }
 0x110   : > { %v637_v52 = vsel %vm608_vm3, %v581_v25, %v600_v51 }
 0x111   : > { %v1272_v53 = vpack.c.bf16 %v637_v52, %v633_v50 }
 0x112   : > { %v1622_v48 = vpop.permute.xlu1 %1621  ;;  %v1617_v23 = vpop.permute.xlu0 %1616 }
 0x113   : > { %1273 = vmatpush1.bf16.msra.mxu0 %v1272_v53  ;;  %v1624_v54 = vunpack.i.h.bf16 %v1622_v48  ;;  %v1623_v55 = vunpack.i.l.bf16 %v1622_v48  ;;  %v1619_v39 = vunpack.i.h.bf16 %v1617_v23  ;;  %v1618_v56 = vunpack.i.l.bf16 %v1617_v23 }
 0x115   : > { %v899_v61 = vsel %vm897_vm8, %v1618_v56, %v1619_v39  ;;  %v901_v62 = vsel %vm897_vm8, %v1623_v55, %v1624_v54  ;;  %v900_v5 = vsel %vm897_vm8, %v1619_v39, %v1623_v55 }
 0x116   : > { %v1632_v57 = vpop.permute.xlu1 %1631  ;;  %v1627_v59 = vpop.permute.xlu0 %1626 }
 0x117   : > { %v1634_v13 = vunpack.i.h.bf16 %v1632_v57  ;;  %v1633_v58 = vunpack.i.l.bf16 %v1632_v57  ;;  %v1629_v36 = vunpack.i.h.bf16 %v1627_v59  ;;  %v1628_v60 = vunpack.i.l.bf16 %v1627_v59 }
 0x119   : > { %v905_v38 = vsel %vm897_vm8, %v1633_v58, %v1634_v13  ;;  %v903_v1 = vsel %vm897_vm8, %v1628_v60, %v1629_v36  ;;  %v904_v6 = vsel %vm897_vm8, %v1629_v36, %v1633_v58 }
 0x11a   : > { %v1304_v3 = vpack.c.bf16 %v905_v38, %v901_v62  ;;  %v1637_v7 = vpop.permute.xlu0 %1636  ;;  %v1274_v8 = vpack.c.bf16 %v903_v1, %v899_v61  ;;  %v1306_v9 = vpack.c.bf16 %v904_v6, %v900_v5  ;;  %v942_v6 = vld [vmem:[%s2228_s2] sm:$0xff] }
 0x11b   : > { %v1639_v0 = vunpack.i.h.bf16 %v1637_v7  ;;  %v1638_v2 = vunpack.i.l.bf16 %v1637_v7 }
 0x11c   : > { %1305 = vmatprep.subr.bf16.mxu1 %v1304_v3  ;;  %1275 = vmatprep.subr.bf16.mxu0 %v1274_v8 }
 0x11d   : > { %1307 = vmatpush1.bf16.msra.mxu1 %v1306_v9  ;;  %v898_v10 = vsel %vm897_vm8, %v1638_v2, %v1618_v56  ;;  %v902_v11 = vsel %vm897_vm8, %v1639_v0, %v1628_v60 }
 0x11e   : > { %v1276_v12 = vpack.c.bf16 %v902_v11, %v898_v10 }
 0x11f   : > { %v1642_v14 = vpop.permute.xlu1 %1641 }
 0x120   : > { %1277 = vmatpush1.bf16.msra.mxu0 %v1276_v12  ;;  %v1644_v17 = vunpack.i.h.bf16 %v1642_v14  ;;  %v1643_v18 = vunpack.i.l.bf16 %v1642_v14 }
 0x121   : > { %v1647_v15 = vpop.permute.xlu0 %1646 }
 0x122   : > { %v1649_v19 = vunpack.i.h.bf16 %v1647_v15  ;;  %v1648_v20 = vunpack.i.l.bf16 %v1647_v15  ;;  %v907_v29 = vsel %vm897_vm8, %v1643_v18, %v1644_v17 }
 0x124   : > { %v909_v31 = vsel %vm897_vm8, %v1648_v20, %v1649_v19  ;;  %v908_v32 = vsel %vm897_vm8, %v1644_v17, %v1648_v20 }
 0x12b   : > { %v1652_v21 = vpop.permute.xlu1 %1651 }
 0x12c   : > { %v1654_v22 = vunpack.i.h.bf16 %v1652_v21  ;;  %v1653_v35 = vunpack.i.l.bf16 %v1652_v21 }
 0x12d   : > { %v1657_v24 = vpop.permute.xlu0 %1656 }
 0x12e   : > { %v1659_v26 = vunpack.i.h.bf16 %v1657_v24  ;;  %v1658_v28 = vunpack.i.l.bf16 %v1657_v24  ;;  %v911_v42 = vsel %vm897_vm8, %v1653_v35, %v1654_v22 }
 0x12f   : > { %v1662_v40 = vpop.permute.xlu1 %1661  ;;  %v1278_v30 = vpack.c.bf16 %v911_v42, %v907_v29 }
 0x130   : > { %v1664_v33 = vunpack.i.h.bf16 %v1662_v40  ;;  %v1663_v34 = vunpack.i.l.bf16 %v1662_v40  ;;  %v913_v37 = vsel %vm897_vm8, %v1658_v28, %v1659_v26  ;;  %v912_v63 = vsel %vm897_vm8, %v1654_v22, %v1658_v28 }
 0x131   : > { %1279 = vmatprep.subr.bf16.mxu0 %v1278_v30  ;;  %v1308_v41 = vpack.c.bf16 %v913_v37, %v909_v31  ;;  %v1310_v43 = vpack.c.bf16 %v912_v63, %v908_v32 }
 0x132   : > { %v906_v16 = vsel %vm897_vm8, %v1663_v34, %v1643_v18  ;;  %v910_v44 = vsel %vm897_vm8, %v1664_v33, %v1653_v35 }
 0x133   : > { %1309 = vmatprep.subr.bf16.mxu1 %v1308_v41  ;;  %v1280_v27 = vpack.c.bf16 %v910_v44, %v906_v16 }
 0x134   : > { %1311 = vmatpush1.bf16.msra.mxu1 %v1310_v43 }
 0x135   : > { %1281 = vmatpush1.bf16.msra.mxu0 %v1280_v27 }
 0x137   : > { %v1667_v45 = vpop.permute.xlu0 %1666 }
 0x138   : > { %v1669_v47 = vunpack.i.h.bf16 %v1667_v45  ;;  %v1668_v49 = vunpack.i.l.bf16 %v1667_v45 }
 0x13a   : > { %v915_v54 = vsel %vm897_vm8, %v1668_v49, %v1669_v47 }
 0x13b   : > { %v1672_v46 = vpop.permute.xlu1 %1671 }
 0x13c   : > { %v1673_v50 = vunpack.i.l.bf16 %v1672_v46  ;;  %v1674_v51 = vunpack.i.h.bf16 %v1672_v46 }
 0x13e   : > { %v1677_v4 = vpop.permute.xlu0 %1676  ;;  %v916_v55 = vsel %vm897_vm8, %v1669_v47, %v1673_v50  ;;  %v917_v57 = vsel %vm897_vm8, %v1673_v50, %v1674_v51 }
 0x13f   : > { %v1679_v25 = vunpack.i.h.bf16 %v1677_v4  ;;  %v1678_v52 = vunpack.i.l.bf16 %v1677_v4  ;;  %v1682_v48 = vpop.permute.xlu1 %1681 }
 0x140   : > { %v1684_v53 = vunpack.i.h.bf16 %v1682_v48  ;;  %v1683_v23 = vunpack.i.l.bf16 %v1682_v48 }
 0x141   : > { %v919_v39 = vsel %vm897_vm8, %v1678_v52, %v1679_v25 }
 0x142   : > { %v1282_v13 = vpack.c.bf16 %v919_v39, %v915_v54  ;;  %v920_v58 = vsel %vm897_vm8, %v1679_v25, %v1683_v23  ;;  %v921_v59 = vsel %vm897_vm8, %v1683_v23, %v1684_v53  ;;  %v1687_v36 = vpop.permute.xlu0 %1686 }
 0x143   : > { %v1312_v60 = vpack.c.bf16 %v921_v59, %v917_v57  ;;  %v1315_v61 = vpack.c.bf16 %v920_v58, %v916_v55  ;;  %v1689_v62 = vunpack.i.h.bf16 %v1687_v36  ;;  %v1688_v38 = vunpack.i.l.bf16 %v1687_v36 }
 0x144   : > { %1284 = vmatprep.subr.msk.bf16.mxu0 %vm2183_vm10, %v1282_v13 }
 0x145   : > { %v914_v1 = vsel %vm897_vm8, %v1688_v38, %v1668_v49  ;;  %v918_v3 = vsel %vm897_vm8, %v1689_v62, %v1678_v52  ;;  %1314 = vmatprep.subr.msk.bf16.mxu1 %vm2183_vm10, %v1312_v60 }
 0x146   : > { %v1285_v5 = vpack.c.bf16 %v918_v3, %v914_v1  ;;  %1317 = vmatpush1.bf16.msk.msra.mxu1 %vm2183_vm10, %v1315_v61 }
 0x148   : > { %1287 = vmatpush1.bf16.msk.msra.mxu0 %vm2183_vm10, %v1285_v5 }
 0x149   : > { %1246 = vmatmul.mubr.msk.f32.vlgmr.msra.gmra.mrb[0].mxu1 %vm428_vm15, %v942_v6 }
 0x14b   : > { %1243 = vmatmul.mubr.msk.f32.vlgmr.msra.gmra.mrb[0].mxu0 %vm428_vm15, %v942_v6 }
 0x150   : > { %v947_v7 = vpop.permute.xlu1 %946 }
 0x21c   : > { %v1097_v8 = vpop.f32.mrb[0].mxu1 }
 0x21d   : > { %v1098_v9 = vadd.f32 %v1097_v8, %v947_v7  ;;  %v1099_v0 = vpop.f32.mrb[1].mxu1 }
 0x21e   : > { %v1100_v2 = vadd.f32 %v1099_v0, %v947_v7  ;;  %v1026_v10 = vpop.f32.mrb[0].mxu0 }
 0x21f   : > { %vm1104_vm3 = vcmp.ge.f32.partialorder %v1098_v9, 0.0  ;;  %v1108_v11 = vmul.f32 0.2, %v1098_v9  ;;  %v1027_v12 = vadd.f32 %v1026_v10, %v947_v7  ;;  %v1028_v14 = vpop.f32.mrb[1].mxu0 }
 0x220   : > { %vm1105_vm11 = vcmp.ge.f32.partialorder %v1100_v2, 0.0  ;;  %v1109_v15 = vmul.f32 0.2, %v1100_v2  ;;  %v1029_v17 = vadd.f32 %v1028_v14, %v947_v7 }
 0x221   : > { %v1112_v18 = vsel %vm1104_vm3, %v1098_v9, %v1108_v11  ;;  %vm1102_vm12 = vcmp.ge.f32.partialorder %v1027_v12, 0.0  ;;  %v1106_v19 = vmul.f32 0.2, %v1027_v12 }
 0x222   : > { %1116 = vst [vmem:[%s305_s30 + $0x10] sm:$0xff] %v1112_v18  ;;  %v1113_v20 = vsel %vm1105_vm11, %v1100_v2, %v1109_v15  ;;  %vm1103_vm13 = vcmp.ge.f32.partialorder %v1029_v17, 0.0  ;;  %v1107_v21 = vmul.f32 0.2, %v1029_v17 }
 0x223   : > { %1117 = vst [vmem:[%s305_s30 + $0x18] sm:$0xff] %v1113_v20  ;;  %v1110_v22 = vsel %vm1102_vm12, %v1027_v12, %v1106_v19 }
 0x224   : > { %1114 = vst [vmem:[%s305_s30] sm:$0xff] %v1110_v22  ;;  %v1111_v35 = vsel %vm1103_vm13, %v1029_v17, %v1107_v21 }
 0x225   : > { %1115 = vst [vmem:[%s305_s30 + $0x8] sm:$0xff] %v1111_v35 }
 0x226 PF: > { %s14_s19 = sadd.s32 1, %s1733_s19   ;;  %s2233_s15 = smov %s1725_s17 }
 0x227   : > { %p11_p9 = scmp.ge.s32.totalorder %s14_s19, 6   ;;  %s2234_s16 = smov %s1729_s18 }
 0x228   : > { %s2235_s17 = smov %s2238_s20  ;;  %s2236_s18 = smov %s2242_s21 }
 0x229   :  { %13 = sbr.rel (!%p11_p9) target bundleno = 3 (0x3), region = 69 }

</bundles_post_ra>
